<compile_context>
chip_gen: v5e
topology: v5e:2x2
jax: 0.10.0
libtpu: 0.0.40
codegen_flags: <defaults>
</compile_context>

<pallas_src>
import functools

import jax
import jax.numpy as jnp
from jax.experimental import pallas as pl
from jax.experimental.pallas import tpu as pltpu


def additive_attn_kernel(x_ref, w_ref, b_ref, o_ref, *, usetanh=False):
    # x_ref: (TB, S, D) VMEM tile of TB batch rows
    # w_ref: (1, D)     VMEM Linear weight (out_features = 1)
    # b_ref: (1, 1)     SMEM Linear bias (scalar)
    # o_ref: (TB, D)    VMEM output tile
    x = x_ref[...]                                      # (TB, S, D) f32
    w = w_ref[...]                                      # (1, D)
    bias = b_ref[0, 0]                                  # scalar f32 from SMEM

    # ---- scores = Linear(D -> 1)(x): VPU multiply + lane reduce, dense (TB, S) ----
    scores = jnp.sum(x * w[None, :, :], axis=-1) + bias           # (TB, S)

    # ---- softmax over the sequence axis (lanes), numerically stable, dense 2D -----
    m = jnp.max(scores, axis=-1, keepdims=True)                   # (TB, 1)
    e = jnp.exp(scores - m)                                       # (TB, S)
    l = jnp.sum(e, axis=-1, keepdims=True)                        # (TB, 1)
    attn = e / l                                                  # (TB, S) exact divide

    # ---- weighted sum over the sequence axis ---------------------------------------
    v = jnp.tanh(x) if usetanh else x                             # module's usetanh path
    out = jnp.sum(v * attn[:, :, None], axis=1)                   # (TB, D)
    o_ref[...] = out.astype(o_ref.dtype)


def _choose_block_b(B, S, D, *, bytes_per_elem=4, budget_bytes=8 << 20, min_steps=1):
    """Largest batch tile whose padded, double-buffered (TB,S,D) input block fits the budget.

    Candidate tiles are restricted to TB == B or TB % 8 == 0 so the 2D output block
    (TB, D) always satisfies the (8, 128) block constraints.
    """
    sub = -(-S // 8) * 8            # sublane padding of the second-to-last dim
    lanes = -(-D // 128) * 128      # lane padding of the last dim (D=64 -> 128)
    row_bytes = 2 * sub * lanes * bytes_per_elem   # x2: double-buffered input DMA

    divisors = [d for d in range(1, B + 1) if B % d == 0]
    candidates = [d for d in divisors if d == B or d % 8 == 0]
    fitting = [d for d in candidates if d * row_bytes <= budget_bytes]
    if not fitting:
        # TODO(synk): tile the sequence axis (online softmax) instead of one big block.
        fitting = [min(candidates)]
    if min_steps > 1:
        multi = [d for d in fitting if B // d >= min_steps]
        if multi:
            return max(multi)
    return max(fitting)


def additive_attention(x, w, b, *, usetanh=False, block_b=None):
    """x: (B, S, D) f32; w: (1, D) f32; b: (1,) or (1, 1) f32  ->  (B, D) f32."""
    B, S, D = x.shape

    if block_b is None:
        kind = ""
        try:
            kind = jax.devices()[0].device_kind.lower()
        except Exception:  # pragma: no cover - defensive only
            pass
        is_v7 = "v7" in kind
        # v7x: 64 MiB/TC -> slightly smaller per-block budget and >= 2 steps per TC.
        # v5e/v6e: single TensorCore, 128 MiB VMEM -> just take the largest fitting tile.
        budget = (6 << 20) if is_v7 else (8 << 20)
        min_steps = 4 if is_v7 else 1
        block_b = _choose_block_b(B, S, D, budget_bytes=budget, min_steps=min_steps)
    assert B % block_b == 0, "batch must be divisible by the batch tile"

    b_smem = jnp.asarray(b, jnp.float32).reshape(1, 1)
    kernel = functools.partial(additive_attn_kernel, usetanh=usetanh)

    out = pl.pallas_call(
        kernel,
        out_shape=jax.ShapeDtypeStruct((B, D), x.dtype),
        grid=(B // block_b,),
        in_specs=[
            pl.BlockSpec((block_b, S, D), lambda i: (i, 0, 0)),          # batch tile
            pl.BlockSpec((1, D), lambda i: (0, 0)),                      # weight (replicated)
            pl.BlockSpec(memory_space=pltpu.MemorySpace.SMEM),           # scalar bias
        ],
        out_specs=pl.BlockSpec((block_b, D), lambda i: (i, 0)),          # dense 2D output
        compiler_params=pltpu.CompilerParams(
            dimension_semantics=("parallel",),
            vmem_limit_bytes=48 * 1024 * 1024,   # safe on v7x (64 MiB/TC) and v5e/v6e
        ),
    )(x, w, b_smem)
    return out


def reference(x, w, b, usetanh=False):
    scores = jnp.einsum("bsd,od->bso", x, w) + jnp.reshape(b, (1, 1, 1))   # (B, S, 1)
    attn = jax.nn.softmax(jnp.squeeze(scores, -1), axis=-1)                # (B, S)
    v = jnp.tanh(x) if usetanh else x
    return jnp.sum(v * attn[..., None], axis=1)                            # (B, D)


if __name__ == "__main__":
    # Module default: Linear(in_features=64, out_features=1)  ->  D = 64.
    D = 64
    key = jax.random.PRNGKey(0)
    kx, kw, kb, kx2 = jax.random.split(key, 4)

    # Torch-style uniform(-1/sqrt(D), 1/sqrt(D)) init for Linear weight/bias.
    bound = 1.0 / (D ** 0.5)
    w = jax.random.uniform(kw, (1, D), minval=-bound, maxval=bound, dtype=jnp.float32)
    b = jax.random.uniform(kb, (1, 1), minval=-bound, maxval=bound, dtype=jnp.float32)

    # Case 1: small default shapes, auto-chosen batch tile (single-block path).
    B1, S1 = 8, 16
    x1 = jax.random.normal(kx, (B1, S1, D), dtype=jnp.float32)
    out1 = jax.block_until_ready(additive_attention(x1, w, b))
    ref1 = reference(x1, w, b)
    assert out1.shape == (B1, D)
    assert jnp.allclose(out1, ref1, atol=1e-4, rtol=1e-4), "mismatch vs reference (case 1)"

    # Case 2: multi-step grid (forced block_b=8) to exercise the pipelined path,
    # plus the usetanh=True branch of the module.
    B2, S2 = 32, 16
    x2 = jax.random.normal(kx2, (B2, S2, D), dtype=jnp.float32)
    out2 = jax.block_until_ready(additive_attention(x2, w, b, block_b=8))
    ref2 = reference(x2, w, b)
    assert jnp.allclose(out2, ref2, atol=1e-4, rtol=1e-4), "mismatch vs reference (case 2)"

    out3 = jax.block_until_ready(additive_attention(x1, w, b, usetanh=True))
    ref3 = reference(x1, w, b, usetanh=True)
    assert jnp.allclose(out3, ref3, atol=1e-4, rtol=1e-4), "mismatch vs reference (usetanh)"

    print("KERNEL_OK")
</pallas_src>

<mosaic_0001>
module attributes {stable_mosaic.version = 11 : i64} {
  func.func @additive_attn_kernel(%arg0: i32, %arg1: memref<8x16x64xf32, #tpu.memory_space<vmem>>, %arg2: memref<1x64xf32, #tpu.memory_space<vmem>>, %arg3: memref<1x1xf32, #tpu.memory_space<smem>>, %arg4: memref<8x64xf32, #tpu.memory_space<vmem>>) attributes {dimension_semantics = [#tpu.dimension_semantics<parallel>], iteration_bounds = array<i64: 1>, scalar_prefetch = 0 : i64, scratch_operands = 0 : i64, tpu.core_type = #tpu.core_type<tc>, window_params = [{transform_indices = @transform_0, window_bounds = array<i64: 8, 16, 64>}, {pipeline_mode = #tpu.pipeline_mode<synchronous>, transform_indices = @transform_1, window_bounds = array<i64: 1, 64>}, {transform_indices = @transform_2, window_bounds = array<i64: 1, 1>}, {transform_indices = @transform_3, window_bounds = array<i64: 8, 64>}]} {
    %c0 = arith.constant 0 : index
    %c0_0 = arith.constant 0 : index
    %c0_1 = arith.constant 0 : index
    %0 = vector.load %arg1[%c0, %c0_0, %c0_1] : memref<8x16x64xf32, #tpu.memory_space<vmem>>, vector<8x16x64xf32>
    %c0_2 = arith.constant 0 : index
    %c0_3 = arith.constant 0 : index
    %1 = vector.load %arg2[%c0_2, %c0_3] : memref<1x64xf32, #tpu.memory_space<vmem>>, vector<1x64xf32>
    %c0_4 = arith.constant 0 : index
    %c0_5 = arith.constant 0 : index
    %2 = memref.load %arg3[%c0_4, %c0_5] : memref<1x1xf32, #tpu.memory_space<smem>>
    %3 = vector.shape_cast %1 : vector<1x64xf32> to vector<1x1x64xf32>
    %4 = vector.broadcast %3 : vector<1x1x64xf32> to vector<8x16x64xf32>
    %5 = arith.mulf %0, %4 : vector<8x16x64xf32>
    %cst = arith.constant dense<0.000000e+00> : vector<8x16xf32>
    %6 = vector.multi_reduction <add>, %5, %cst [2] : vector<8x16x64xf32> to vector<8x16xf32>
    %7 = vector.broadcast %2 : f32 to vector<8x16xf32>
    %8 = arith.addf %6, %7 : vector<8x16xf32>
    %cst_6 = arith.constant dense<0xFF800000> : vector<8xf32>
    %9 = vector.multi_reduction <maximumf>, %8, %cst_6 [1] : vector<8x16xf32> to vector<8xf32>
    %10 = vector.shape_cast %9 : vector<8xf32> to vector<8x1xf32>
    %11 = vector.broadcast %10 : vector<8x1xf32> to vector<8x16xf32>
    %12 = arith.subf %8, %11 : vector<8x16xf32>
    %13 = math.exp %12 : vector<8x16xf32>
    %cst_7 = arith.constant dense<0.000000e+00> : vector<8xf32>
    %14 = vector.multi_reduction <add>, %13, %cst_7 [1] : vector<8x16xf32> to vector<8xf32>
    %15 = vector.shape_cast %14 : vector<8xf32> to vector<8x1xf32>
    %16 = vector.broadcast %15 : vector<8x1xf32> to vector<8x16xf32>
    %17 = arith.divf %13, %16 : vector<8x16xf32>
    %18 = vector.shape_cast %17 : vector<8x16xf32> to vector<8x16x1xf32>
    %19 = vector.broadcast %18 : vector<8x16x1xf32> to vector<8x16x64xf32>
    %20 = arith.mulf %0, %19 : vector<8x16x64xf32>
    %cst_8 = arith.constant dense<0.000000e+00> : vector<8x64xf32>
    %21 = vector.multi_reduction <add>, %20, %cst_8 [1] : vector<8x16x64xf32> to vector<8x64xf32>
    %c0_9 = arith.constant 0 : index
    %c0_10 = arith.constant 0 : index
    %22 = vector.load %arg4[%c0_9, %c0_10] : memref<8x64xf32, #tpu.memory_space<vmem>>, vector<8x64xf32>
    tpu.vector_store %arg4[%c0_9, %c0_10], %21 {strides = array<i32>} : memref<8x64xf32, #tpu.memory_space<vmem>>, vector<8x64xf32>,
    return
  }
  func.func @transform_0(%arg0: i32) -> (i32, i32, i32) {
    %c0_i32 = arith.constant 0 : i32
    %c0_i32_0 = arith.constant 0 : i32
    %c0_i32_1 = arith.constant 0 : i32
    return %arg0, %c0_i32, %c0_i32_0 : i32, i32, i32
  }
  func.func @transform_1(%arg0: i32) -> (i32, i32) {
    %c0_i32 = arith.constant 0 : i32
    %c0_i32_0 = arith.constant 0 : i32
    %c0_i32_1 = arith.constant 0 : i32
    return %c0_i32, %c0_i32_0 : i32, i32
  }
  func.func @transform_2(%arg0: i32) -> (i32, i32) {
    %c0_i32 = arith.constant 0 : i32
    %c0_i32_0 = arith.constant 0 : i32
    %c0_i32_1 = arith.constant 0 : i32
    return %c0_i32, %c0_i32_0 : i32, i32
  }
  func.func @transform_3(%arg0: i32) -> (i32, i32) {
    %c0_i32 = arith.constant 0 : i32
    %c0_i32_0 = arith.constant 0 : i32
    return %arg0, %c0_i32 : i32, i32
  }
}

</mosaic_0001>

<bundles_post_ra>
// kernel: tpu_custom_call.1
= control target key start
LH: loop header
LB: loop body
LE: loop exit
PB: predicated region body
PF: predicated region fallthrough
CT: control target
= control target key end

     0   :  { %9 = vsyncpa [#allocation4], 0  ;;  %s1235_s0 = inlined_call_operand.hbm [shape: f32[8,16,64], index: 0, kind: input, shape index: {}]   ;;  %s1236_s1 = inlined_call_operand.vmem [shape: f32[1,64], index: 1, kind: input, shape index: {}]   ;;  %s1237_s2 = inlined_call_operand.<no memory space> [shape: f32[1,1], index: 2, kind: input, shape index: {}]   ;;  %s1238_s3 = inlined_call_operand.hbm [shape: f32[8,64], index: 3, kind: output, shape index: {}]  }
   0x1   :  { %10 = vsyncpa [#allocation5], 0  ;;  %s15_s14 = sshll.u32 %s1235_s0, 4  ;;  %s818_s15 = smov [#allocation3]   ;;  %s16_s14 = int_to_ptr.hbm [resolvable:$true] %s15_s14 }
   0x2   :  { %s17_s16 = sshll.u32 %s818_s15, 4  ;;  %s819_s17 = smov 128   ;;  %s18_s16 = int_to_ptr.vmem [resolvable:$true] %s17_s16 }
   0x3   :  { %s820_s18 = smov 8  }
   0x4   :  { %23 = dma.hbm_to_vmem [thread:$0]  %s16_s14, 2048, %s18_s16, [#allocation4], %s819_s17, %s819_s17, %s820_s18  }
   0x5   :  { %814 = dma.done.wait [#allocation4], 2048  }
   0x6   :  { %815 = vsyncadd [#allocation4], 4294965248  ;;  %v846_v0 = vld [vmem:[#allocation3 + $0x20] sm:$0xff]  ;;  %vm69_vm0 = vcmask 523264   ;;  %v851_v2 = vld [vmem:[#allocation3 + $0x10] sm:$0xff]  ;;  %v151_v58 = vlaneseq  ;;  %v118_v60 = vstv %s1237_s2  ;;  %vm156_vm1 = vcmask 130112  }
   0x7   :  { %v717_v1 = vld [vmem:[%s1236_s1] ss:$0 sm:$0xff]  ;;  %v858_v7 = vld [vmem:[#allocation3 + $0x28] sm:$0xff]  ;;  %v860_v8 = vld [vmem:[#allocation3 + $0x18] sm:$0xff]  ;;  %vm179_vm2 = vcmask 1041409   ;;  %vm181_vm3 = vcmask 1042434  }
   0x8   :  { %v853_v3 = vld [vmem:[#allocation3] sm:$0xff]  ;;  %v57_v4 = vmul.f32 %v717_v1, %v846_v0  ;;  %v55_v5 = vmul.f32 %v717_v1, %v851_v2  ;;  %v865_v12 = vld [vmem:[#allocation3 + $0x8] sm:$0xff]  ;;  %v58_v13 = vmul.f32 %v717_v1, %v858_v7  ;;  %v56_v14 = vmul.f32 %v717_v1, %v860_v8  ;;  %v873_v19 = vld [vmem:[#allocation3 + $0x38] sm:$0xff]  ;;  %s822_s2 = smov [#allocation6]   ;;  %s699_s24 = sshll.u32 %s1238_s3, 4  ;;  %s700_s24 = int_to_ptr.hbm [resolvable:$true] %s699_s24 }
   0x9   :  { %v53_v6 = vmul.f32 %v717_v1, %v853_v3  ;;  %v54_v15 = vmul.f32 %v717_v1, %v865_v12  ;;  %v875_v20 = vld [vmem:[#allocation3 + $0x40] sm:$0xff]  ;;  %v877_v21 = vld [vmem:[#allocation3 + $0x30] sm:$0xff]  ;;  %v60_v22 = vmul.f32 %v717_v1, %v873_v19  ;;  %v887_v29 = vld [vmem:[#allocation3 + $0x58] sm:$0xff]  ;;  %v913_v59 = vand.u32 127, %v151_v58  ;;  %s697_s21 = sshll.u32 %s822_s2, 4  ;;  %s698_s21 = int_to_ptr.vmem [resolvable:$true] %s697_s21 }
   0xa   :  { %v82_v9 = vsel %vm69_vm0, %v57_v4, 0.0  ;;  %v76_v10 = vsel %vm69_vm0, %v55_v5, 0.0  ;;  %v85_v16 = vsel %vm69_vm0, %v58_v13, 0.0  ;;  %v79_v17 = vsel %vm69_vm0, %v56_v14, 0.0  ;;  %v885_v28 = vld [vmem:[#allocation3 + $0x50] sm:$0xff]  ;;  %v889_v30 = vld [vmem:[#allocation3 + $0x48] sm:$0xff] }
   0xb   :  { %v70_v11 = vsel %vm69_vm0, %v53_v6, 0.0  ;;  %83 = vadd.xlane.f32.xlu2 %v82_v9  ;;  %77 = vadd.xlane.f32.xlu1 %v76_v10  ;;  %v73_v18 = vsel %vm69_vm0, %v54_v15, 0.0  ;;  %v61_v23 = vmul.f32 %v717_v1, %v875_v20  ;;  %v59_v24 = vmul.f32 %v717_v1, %v877_v21  ;;  %v897_v37 = vld [vmem:[#allocation3 + $0x68] sm:$0xff]  ;;  %v899_v38 = vld [vmem:[#allocation3 + $0x70] sm:$0xff]  ;;  %v901_v39 = vld [vmem:[#allocation3 + $0x60] sm:$0xff] }
   0xc   :  { %71 = vadd.xlane.f32.xlu0 %v70_v11  ;;  %v91_v25 = vsel %vm69_vm0, %v60_v22, 0.0  ;;  %v63_v31 = vmul.f32 %v717_v1, %v885_v28  ;;  %v64_v32 = vmul.f32 %v717_v1, %v887_v29  ;;  %v62_v33 = vmul.f32 %v717_v1, %v889_v30  ;;  %v909_v46 = vld [vmem:[#allocation3 + $0x78] sm:$0xff] }
   0xd   :  { %v94_v26 = vsel %vm69_vm0, %v61_v23, 0.0  ;;  %v88_v27 = vsel %vm69_vm0, %v59_v24, 0.0  ;;  %v66_v40 = vmul.f32 %v717_v1, %v897_v37  ;;  %v67_v41 = vmul.f32 %v717_v1, %v899_v38 }
   0xe   :  { %v100_v34 = vsel %vm69_vm0, %v63_v31, 0.0  ;;  %v103_v35 = vsel %vm69_vm0, %v64_v32, 0.0  ;;  %v97_v36 = vsel %vm69_vm0, %v62_v33, 0.0  ;;  %v65_v42 = vmul.f32 %v717_v1, %v901_v39 }
   0xf   :  { %v109_v43 = vsel %vm69_vm0, %v66_v40, 0.0  ;;  %v112_v44 = vsel %vm69_vm0, %v67_v41, 0.0  ;;  %v68_v47 = vmul.f32 %v717_v1, %v909_v46  ;;  %v921_v63 = vadd.s32 4294967288, %v913_v59 }
  0x10   :  { %v106_v45 = vsel %vm69_vm0, %v65_v42, 0.0  ;;  %vm183_vm4 = vcmask 1043459   ;;  %vm185_vm5 = vcmask 1044484   ;;  %vm187_vm6 = vcmask 1045509  }
  0x11   :  { %v115_v48 = vsel %vm69_vm0, %v68_v47, 0.0  ;;  %vm189_vm7 = vcmask 1046534   ;;  %vm191_vm8 = vcmask 1047559   ;;  %vm194_vm9 = vcmask 130048  }
  0x13   :  { %86 = vadd.xlane.f32.xlu2 %v85_v16  ;;  %80 = vadd.xlane.f32.xlu1 %v79_v17 }
  0x14   :  { %74 = vadd.xlane.f32.xlu0 %v73_v18 }
  0x1b   :  { %92 = vadd.xlane.f32.xlu1 %v91_v25  ;;  %95 = vadd.xlane.f32.xlu2 %v94_v26 }
  0x1c   :  { %89 = vadd.xlane.f32.xlu0 %v88_v27 }
  0x23   :  { %101 = vadd.xlane.f32.xlu1 %v100_v34  ;;  %104 = vadd.xlane.f32.xlu2 %v103_v35 }
  0x24   :  { %98 = vadd.xlane.f32.xlu0 %v97_v36 }
  0x2b   :  { %110 = vadd.xlane.f32.xlu1 %v109_v43  ;;  %113 = vadd.xlane.f32.xlu2 %v112_v44 }
  0x2c   :  { %107 = vadd.xlane.f32.xlu0 %v106_v45 }
  0x34   :  { %116 = vadd.xlane.f32.xlu0 %v115_v48 }
  0x7e   :  { %v84_v49 = vpop.xlane.xlu2 %83  ;;  %v78_v50 = vpop.xlane.xlu1 %77 }
  0x7f   :  { %v72_v51 = vpop.xlane.xlu0 %71  ;;  %v918_v62 = vadd.f32 %v118_v60, %v78_v50  ;;  %v929_v10 = vadd.f32 %v118_v60, %v84_v49 }
  0x80   :  { %v927_v6 = vadd.f32 %v118_v60, %v72_v51 }
  0x81   :  { %v158_v11 = vperm.slane %v918_v62, %v913_v59  ;;  %v161_v25 = vperm.slane %v929_v10, %v913_v59 }
  0x82   :  { %v153_v18 = vperm.slane %v927_v6, %v913_v59 }
  0x86   :  { %v87_v52 = vpop.xlane.xlu2 %86  ;;  %v81_v53 = vpop.xlane.xlu1 %80 }
  0x87   :  { %v75_v54 = vpop.xlane.xlu0 %74  ;;  %v923_v1 = vadd.f32 %v118_v60, %v81_v53  ;;  %v933_v13 = vadd.f32 %v118_v60, %v87_v52 }
  0x88   :  { %v925_v4 = vadd.f32 %v118_v60, %v75_v54 }
  0x89   :  { %v159_v14 = vperm.slane %v923_v1, %v921_v63  ;;  %v162_v26 = vperm.slane %v933_v13, %v921_v63 }
  0x8a   :  { %v155_v15 = vperm.slane %v925_v4, %v921_v63 }
  0x8b   :  { %v160_v27 = vsel %vm156_vm1, %v159_v14, %v158_v11  ;;  %v163_v45 = vsel %vm156_vm1, %v162_v26, %v161_v25  ;;  %v821_v26 = vmov 0  }
  0x8c   :  { %v157_v31 = vsel %vm156_vm1, %v155_v15, %v153_v18  ;;  %716 = vset.pattern.permute.xlu1 %v821_v26  ;;  %715 = vset.pattern.permute.xlu0 %v821_v26 }
  0x8d   :  { %v180_v47 = vsel %vm179_vm2, %v160_v27, %v157_v31  ;;  %714 = vset.pattern.permute.xlu2 %v821_v26 }
  0x8e   :  { %v93_v55 = vpop.xlane.xlu1 %92  ;;  %v96_v57 = vpop.xlane.xlu2 %95 }
  0x8f   :  { %v90_v56 = vpop.xlane.xlu0 %89  ;;  %v939_v16 = vadd.f32 %v118_v60, %v93_v55  ;;  %v945_v22 = vadd.f32 %v118_v60, %v96_v57  ;;  %v182_v55 = vsel %vm181_vm3, %v163_v45, %v180_v47 }
  0x90   :  { %v941_v17 = vadd.f32 %v118_v60, %v90_v56 }
  0x91   :  { %v165_v33 = vperm.slane %v939_v16, %v921_v63  ;;  %v167_v40 = vperm.slane %v945_v22, %v913_v59 }
  0x92   :  { %v164_v34 = vperm.slane %v941_v17, %v913_v59 }
  0x94   :  { %v166_v48 = vsel %vm156_vm1, %v165_v33, %v164_v34 }
  0x95   :  { %v184_v56 = vsel %vm183_vm4, %v166_v48, %v182_v55 }
  0x96   :  { %v102_v61 = vpop.xlane.xlu1 %101  ;;  %v105_v9 = vpop.xlane.xlu2 %104 }
  0x97   :  { %v99_v5 = vpop.xlane.xlu0 %98  ;;  %v959_v35 = vadd.f32 %v118_v60, %v102_v61  ;;  %v961_v36 = vadd.f32 %v118_v60, %v105_v9 }
  0x98   :  { %v947_v23 = vadd.f32 %v118_v60, %v99_v5 }
  0x99   :  { %v170_v49 = vperm.slane %v959_v35, %v913_v59  ;;  %v171_v50 = vperm.slane %v961_v36, %v921_v63 }
  0x9a   :  { %v168_v41 = vperm.slane %v947_v23, %v921_v63 }
  0x9b   :  { %v172_v58 = vsel %vm156_vm1, %v171_v50, %v170_v49 }
  0x9c   :  { %v169_v52 = vsel %vm156_vm1, %v168_v41, %v167_v40 }
  0x9d   :  { %v186_v9 = vsel %vm185_vm5, %v169_v52, %v184_v56 }
  0x9e   :  { %v111_v24 = vpop.xlane.xlu1 %110  ;;  %v114_v44 = vpop.xlane.xlu2 %113  ;;  %v188_v15 = vsel %vm187_vm6, %v172_v58, %v186_v9 }
  0x9f   :  { %v108_v32 = vpop.xlane.xlu0 %107  ;;  %v967_v42 = vadd.f32 %v118_v60, %v111_v24  ;;  %v978_v51 = vadd.f32 %v118_v60, %v114_v44 }
  0xa0   :  { %v969_v43 = vadd.f32 %v118_v60, %v108_v32 }
  0xa1   :  { %v174_v53 = vperm.slane %v967_v42, %v921_v63  ;;  %v176_v61 = vperm.slane %v978_v51, %v913_v59 }
  0xa2   :  { %v173_v54 = vperm.slane %v969_v43, %v913_v59 }
  0xa4   :  { %v175_v11 = vsel %vm156_vm1, %v174_v53, %v173_v54 }
  0xa5   :  { %v190_v24 = vsel %vm189_vm7, %v175_v11, %v188_v15 }
  0xa7   :  { %v117_v57 = vpop.xlane.xlu0 %116 }
  0xa8   :  { %v990_v5 = vadd.f32 %v118_v60, %v117_v57 }
  0xaa   :  { %v177_v14 = vperm.slane %v990_v5, %v921_v63 }
  0xac   :  { %v178_v18 = vsel %vm156_vm1, %v177_v14, %v176_v61 }
  0xad   :  { %v192_v25 = vsel %vm191_vm8, %v178_v18, %v190_v24 }
  0xae   :  { %v195_v60 = vsel %vm194_vm9, %v192_v25, -inf }
  0xaf   :  { %196 = vmax.xlane.f32.xlu1 %v195_v60 }
 0x122   :  { %v1001_v27 = vpop.xlane.xlu1 %196 }
 0x123   :  { %v200_v31 = vperm.slane %v1001_v27, 1  ;;  %v199_v32 = vperm.slane %v1001_v27, 0  ;;  %v201_v41 = vperm.slane %v1001_v27, 2  ;;  %v203_v44 = vperm.slane %v1001_v27, 4 }
 0x124   :  { %v204_v53 = vperm.slane %v1001_v27, 5  ;;  %v206_v9 = vperm.slane %v1001_v27, 7  ;;  %v205_v25 = vperm.slane %v1001_v27, 6 }
 0x125   :  { %v217_v33 = vsub.f32 %v918_v62, %v200_v31  ;;  %v216_v34 = vsub.f32 %v925_v4, %v199_v32  ;;  %v215_v40 = vsub.f32 %v927_v6, %v199_v32  ;;  %v220_v49 = vsub.f32 %v933_v13, %v201_v41 }
 0x126   :  { %v223_v50 = vsub.f32 %v945_v22, %v203_v44  ;;  %v218_v62 = vsub.f32 %v923_v1, %v200_v31  ;;  %v202_v4 = vperm.slane %v1001_v27, 3  ;;  %v226_v22 = vsub.f32 %v961_v36, %v204_v53 }
 0x127   :  { %v235_v45 = vmul.f32 1.442695, %v217_v33  ;;  %v233_v47 = vmul.f32 1.442695, %v216_v34  ;;  %v231_v48 = vmul.f32 1.442695, %v215_v40  ;;  %v219_v57 = vsub.f32 %v929_v10, %v201_v41 }
 0x128   :  { %v241_v52 = vmul.f32 1.442695, %v220_v49  ;;  %v247_v6 = vmul.f32 1.442695, %v223_v50  ;;  %v237_v55 = vmul.f32 1.442695, %v218_v62  ;;  %v222_v1 = vsub.f32 %v939_v16, %v202_v4 }
 0x129   :  { %718 = vpow2.f32 %v235_v45  ;;  %v253_v61 = vmul.f32 1.442695, %v226_v22  ;;  %v239_v14 = vmul.f32 1.442695, %v219_v57  ;;  %v225_v36 = vsub.f32 %v959_v35, %v204_v53 }
 0x12a   :  { %720 = vpow2.f32 %v233_v47  ;;  %v245_v58 = vmul.f32 1.442695, %v222_v1  ;;  %v229_v10 = vsub.f32 %v978_v51, %v206_v9  ;;  %v221_v18 = vsub.f32 %v941_v17, %v202_v4 }
 0x12b   :  { %722 = vpow2.f32 %v231_v48  ;;  %v251_v24 = vmul.f32 1.442695, %v225_v36  ;;  %v228_v51 = vsub.f32 %v967_v42, %v205_v25  ;;  %v224_v17 = vsub.f32 %v947_v23, %v203_v44 }
 0x12c   :  { %724 = vpow2.f32 %v241_v52  ;;  %v259_v60 = vmul.f32 1.442695, %v229_v10  ;;  %v243_v31 = vmul.f32 1.442695, %v221_v18  ;;  %v227_v42 = vsub.f32 %v969_v43, %v205_v25 }
 0x12d   :  { %726 = vpow2.f32 %v247_v6  ;;  %v257_v27 = vmul.f32 1.442695, %v228_v51  ;;  %v249_v34 = vmul.f32 1.442695, %v224_v17  ;;  %v230_v47 = vsub.f32 %v990_v5, %v206_v9 }
 0x12e   :  { %728 = vpow2.f32 %v237_v55  ;;  %v255_v23 = vmul.f32 1.442695, %v227_v42 }
 0x12f   :  { %v1015_v54 = vpop.eup %718  ;;  %730 = vpow2.f32 %v245_v58  ;;  %v261_v48 = vmul.f32 1.442695, %v230_v47 }
 0x130   :  { %v1017_v56 = vpop.eup %720  ;;  %286 = vperm.xlu1 %716, %v1015_v54   ;;  %732 = vpow2.f32 %v253_v61 }
 0x131   :  { %v1020_v13 = vpop.eup %722  ;;  %283 = vperm.xlu0 %715, %v1017_v56   ;;  %734 = vpow2.f32 %v239_v14 }
 0x132   :  { %280 = vperm.xlu2 %714, %v1020_v13   ;;  %v1028_v11 = vpop.eup %724  ;;  %736 = vpow2.f32 %v251_v24 }
 0x133   :  { %v1030_v15 = vpop.eup %726  ;;  %738 = vpow2.f32 %v259_v60 }
 0x134   :  { %v1033_v16 = vpop.eup %728  ;;  %740 = vpow2.f32 %v243_v31 }
 0x135   :  { %v1041_v26 = vpop.eup %730  ;;  %742 = vpow2.f32 %v257_v27 }
 0x136   :  { %v1043_v32 = vpop.eup %732  ;;  %744 = vpow2.f32 %v249_v34 }
 0x137   :  { %v1046_v35 = vpop.eup %734  ;;  %746 = vpow2.f32 %v255_v23 }
 0x138   :  { %295 = vperm.xlu1 %716, %v1028_v11   ;;  %v1052_v33 = vpop.eup %736  ;;  %748 = vpow2.f32 %v261_v48 }
 0x139   :  { %304 = vperm.xlu0 %715, %v1030_v15   ;;  %v1054_v40 = vpop.eup %738 }
 0x13a   :  { %289 = vperm.xlu2 %714, %v1033_v16   ;;  %v1057_v41 = vpop.eup %740 }
 0x13b   :  { %v1062_v45 = vpop.eup %742 }
 0x13c   :  { %v1065_v44 = vpop.eup %744 }
 0x13d   :  { %v1069_v49 = vpop.eup %746 }
 0x13e   :  { %v1072_v50 = vpop.eup %748 }
 0x140   :  { %301 = vperm.xlu1 %716, %v1041_v26  }
 0x141   :  { %313 = vperm.xlu0 %715, %v1043_v32  }
 0x142   :  { %292 = vperm.xlu2 %714, %v1046_v35  }
 0x148   :  { %310 = vperm.xlu1 %716, %v1052_v33  }
 0x149   :  { %322 = vperm.xlu0 %715, %v1054_v40  }
 0x14a   :  { %298 = vperm.xlu2 %714, %v1057_v41  }
 0x150   :  { %319 = vperm.xlu1 %716, %v1062_v45  }
 0x152   :  { %307 = vperm.xlu2 %714, %v1065_v44  }
 0x15a   :  { %316 = vperm.xlu2 %714, %v1069_v49  }
 0x162   :  { %325 = vperm.xlu2 %714, %v1072_v50  }
 0x18c   :  { %v281_v43 = vpop.permute.xlu2 %280 }
 0x18d   :  { %v327_v36 = vperm.slane %v281_v43, %v913_v59 }
 0x194   :  { %v290_v62 = vpop.permute.xlu2 %289 }
 0x195   :  { %v331_v10 = vperm.slane %v290_v62, %v921_v63 }
 0x19c   :  { %v293_v52 = vpop.permute.xlu2 %292 }
 0x19d   :  { %v333_v25 = vperm.slane %v293_v52, %v913_v59 }
 0x1a2   :  { %v287_v4 = vpop.permute.xlu1 %286 }
 0x1a3   :  { %v284_v6 = vpop.permute.xlu0 %283  ;;  %v330_v61 = vperm.slane %v287_v4, %v913_v59 }
 0x1a4   :  { %v299_v53 = vpop.permute.xlu2 %298  ;;  %v328_v9 = vperm.slane %v284_v6, %v921_v63 }
 0x1a5   :  { %v332_v60 = vsel %vm156_vm1, %v331_v10, %v330_v61  ;;  %v336_v51 = vperm.slane %v299_v53, %v913_v59 }
 0x1a6   :  { %v329_v31 = vsel %vm156_vm1, %v328_v9, %v327_v36 }
 0x1a7   :  { %v351_v42 = vsel %vm179_vm2, %v332_v60, %v329_v31 }
 0x1aa   :  { %v296_v55 = vpop.permute.xlu1 %295 }
 0x1ab   :  { %v305_v1 = vpop.permute.xlu0 %304  ;;  %v334_v14 = vperm.slane %v296_v55, %v921_v63 }
 0x1ac   :  { %v308_v22 = vpop.permute.xlu2 %307  ;;  %v339_v23 = vperm.slane %v305_v1, %v913_v59 }
 0x1ad   :  { %v335_v17 = vsel %vm156_vm1, %v334_v14, %v333_v25  ;;  %v340_v47 = vperm.slane %v308_v22, %v921_v63 }
 0x1ae   :  { %v352_v62 = vsel %vm181_vm3, %v335_v17, %v351_v42 }
 0x1af   :  { %v341_v61 = vsel %vm156_vm1, %v340_v47, %v339_v23 }
 0x1b2   :  { %v302_v5 = vpop.permute.xlu1 %301 }
 0x1b3   :  { %v314_v57 = vpop.permute.xlu0 %313  ;;  %v337_v18 = vperm.slane %v302_v5, %v921_v63 }
 0x1b4   :  { %v317_v58 = vpop.permute.xlu2 %316  ;;  %v343_v52 = vperm.slane %v314_v57, %v921_v63 }
 0x1b5   :  { %v338_v27 = vsel %vm156_vm1, %v337_v18, %v336_v51  ;;  %v345_v1 = vperm.slane %v317_v58, %v913_v59 }
 0x1b6   :  { %v353_v4 = vsel %vm183_vm4, %v338_v27, %v352_v62 }
 0x1b7   :  { %v354_v9 = vsel %vm185_vm5, %v341_v61, %v353_v4 }
 0x1ba   :  { %v311_v24 = vpop.permute.xlu1 %310 }
 0x1bb   :  { %v342_v34 = vperm.slane %v311_v24, %v913_v59  ;;  %v323_v48 = vpop.permute.xlu0 %322 }
 0x1bc   :  { %v326_v43 = vpop.permute.xlu2 %325  ;;  %v348_v53 = vperm.slane %v323_v48, %v913_v59 }
 0x1bd   :  { %v344_v6 = vsel %vm156_vm1, %v343_v52, %v342_v34  ;;  %v349_v55 = vperm.slane %v326_v43, %v921_v63 }
 0x1be   :  { %v355_v57 = vsel %vm187_vm6, %v344_v6, %v354_v9 }
 0x1bf   :  { %v350_v36 = vsel %vm156_vm1, %v349_v55, %v348_v53 }
 0x1c2   :  { %v320_v5 = vpop.permute.xlu1 %319 }
 0x1c3   :  { %v346_v22 = vperm.slane %v320_v5, %v921_v63 }
 0x1c5   :  { %v347_v14 = vsel %vm156_vm1, %v346_v22, %v345_v1 }
 0x1c6   :  { %v356_v10 = vsel %vm189_vm7, %v347_v14, %v355_v57 }
 0x1c7   :  { %v357_v18 = vsel %vm191_vm8, %v350_v36, %v356_v10 }
 0x1c8   :  { %v359_v24 = vsel %vm194_vm9, %v357_v18, 0.0 }
 0x1c9   :  { %360 = vadd.xlane.f32.xlu1 %v359_v24 }
 0x23c   :  { %v1107_v25 = vpop.xlane.xlu1 %360 }
 0x23d   :  { %v363_v59 = vperm.slane %v1107_v25, 0  ;;  %v364_v63 = vperm.slane %v1107_v25, 1  ;;  %v1112_v58 = vperm.slane %v1107_v25, 2  ;;  %v368_v60 = vperm.slane %v1107_v25, 5 }
 0x23e   :  { %v1117_v51 = vperm.slane %v1107_v25, 3  ;;  %v1125_v55 = vperm.slane %v1107_v25, 4 }
 0x23f   :  { %750 = vrcp.f32 %v363_v59  ;;  %v388_v47 = vand.u32 2147483647, %v363_v59  ;;  %v390_v48 = vand.u32 2147483648, %v363_v59  ;;  %v468_v5 = vand.u32 2147483647, %v368_v60 }
 0x240   :  { %752 = vrcp.f32 %v364_v63  ;;  %vm384_vm11 = vweird.f32 %v363_v59  ;;  %v470_v22 = vand.u32 2147483648, %v368_v60  ;;  %vm400_vm1 = vweird.f32 %v364_v63 }
 0x241   :  { %754 = vrcp.f32 %v1112_v58  ;;  %vm389_vm13 = vcmp.eq.f32.partialorder %v388_v47, 8.507059e+37  ;;  %v391_v9 = vor.u32 1.1754944e-38, %v390_v48  ;;  %vm464_vm9 = vweird.f32 %v368_v60 }
 0x242   :  { %756 = vrcp.f32 %v368_v60  ;;  %v471_v48 = vor.u32 1.1754944e-38, %v470_v22 }
 0x243   :  { %758 = vrcp.f32 %v1117_v51 }
 0x244   :  { %760 = vrcp.f32 %v1125_v55 }
 0x245   :  { %v751_v31 = vpop.eup %750 }
 0x246   :  { %v753_v17 = vpop.eup %752  ;;  %v380_v27 = vmul.f32 %v751_v31, %v363_v59  ;;  %vm385_vm10 = vweird.f32 %v751_v31  ;;  %v404_v59 = vand.u32 2147483647, %v364_v63 }
 0x247   :  { %v1119_v34 = vpop.eup %754  ;;  %v396_v42 = vmul.f32 %v753_v17, %v364_v63  ;;  %vm386_vm12 = vmor %vm384_vm11, %vm385_vm10  ;;  %vm401_vm14 = vweird.f32 %v753_v17 }
 0x248   :  { %v381_v23 = vsub.f32 1.0, %v380_v27  ;;  %v757_v62 = vpop.eup %756  ;;  %v412_v4 = vmul.f32 %v1119_v34, %v1112_v58  ;;  %v406_v27 = vand.u32 2147483648, %v364_v63  ;;  %vm1132_vm10 = vmor %vm400_vm1, %vm401_vm14  ;;  %vm417_vm14 = vweird.f32 %v1119_v34 }
 0x249   :  { %v397_v43 = vsub.f32 1.0, %v396_v42  ;;  %v460_v6 = vmul.f32 %v757_v62, %v368_v60  ;;  %v1127_v10 = vpop.eup %758  ;;  %vm465_vm15 = vweird.f32 %v757_v62 }
 0x24a   :  { %v382_v52 = vmul.f32 %v751_v31, %v381_v23  ;;  %v413_v36 = vsub.f32 1.0, %v412_v4  ;;  %vm466_vm11 = vmor %vm464_vm9, %vm465_vm15  ;;  %v1144_v4 = vperm.slane %v1107_v25, 6  ;;  %vm416_vm15 = vweird.f32 %v1112_v58 }
 0x24b   :  { %v398_v53 = vmul.f32 %v753_v17, %v397_v43  ;;  %v461_v1 = vsub.f32 1.0, %v460_v6  ;;  %vm418_vm1 = vmor %vm416_vm15, %vm417_vm14  ;;  %vm448_vm15 = vweird.f32 %v1125_v55 }
 0x24c   :  { %v383_v61 = vadd.f32 %v751_v31, %v382_v52  ;;  %v407_v52 = vor.u32 1.1754944e-38, %v406_v27  ;;  %762 = vrcp.f32 %v1144_v4  ;;  %v438_v27 = vand.u32 2147483648, %v1117_v51 }
 0x24d   :  { %v399_v57 = vadd.f32 %v753_v17, %v398_v53  ;;  %v462_v18 = vmul.f32 %v757_v62, %v461_v1  ;;  %v761_v1 = vpop.eup %760 }
 0x24e   :  { %v387_v14 = vsel %vm386_vm12, %v751_v31, %v383_v61  ;;  %vm469_vm12 = vcmp.eq.f32.partialorder %v468_v5, 8.507059e+37  ;;  %v439_v31 = vor.u32 1.1754944e-38, %v438_v27  ;;  %vm449_vm14 = vweird.f32 %v761_v1 }
 0x24f   :  { %v392_v24 = vsel %vm389_vm13, %v391_v9, %v387_v14  ;;  %v463_v47 = vadd.f32 %v757_v62, %v462_v18  ;;  %v403_v43 = vsel %vm1132_vm10, %v753_v17, %v399_v57  ;;  %vm405_vm13 = vcmp.eq.f32.partialorder %v404_v59, 8.507059e+37 }
 0x250   :  { %v394_v42 = vmul.f32 %v1017_v56, %v392_v24  ;;  %v393_v23 = vmul.f32 %v1020_v13, %v392_v24  ;;  %v414_v56 = vmul.f32 %v1119_v34, %v413_v36  ;;  %v428_v13 = vmul.f32 %v1127_v10, %v1117_v51 }
 0x251   :  { %v467_v63 = vsel %vm466_vm11, %v757_v62, %v463_v47  ;;  %v408_v53 = vsel %vm405_vm13, %v407_v52, %v403_v43  ;;  %v422_v62 = vand.u32 2147483648, %v1112_v58  ;;  %v420_v9 = vand.u32 2147483647, %v1112_v58 }
 0x252   :  { %514 = vperm.xlu2 %714, %v394_v42   ;;  %509 = vperm.xlu0 %715, %v393_v23   ;;  %v1141_v60 = vsel %vm469_vm12, %v471_v48, %v467_v63  ;;  %v415_v17 = vadd.f32 %v1119_v34, %v414_v56  ;;  %v429_v61 = vsub.f32 1.0, %v428_v13  ;;  %v410_v5 = vmul.f32 %v1033_v16, %v408_v53  ;;  %v763_v24 = vpop.eup %762 }
 0x253   :  { %v473_v6 = vmul.f32 %v1052_v33, %v1141_v60  ;;  %v409_v22 = vmul.f32 %v1015_v54, %v408_v53  ;;  %v444_v57 = vmul.f32 %v761_v1, %v1125_v55  ;;  %v423_v36 = vor.u32 1.1754944e-38, %v422_v62 }
 0x254   :  { %v419_v33 = vsel %vm418_vm1, %v1119_v34, %v415_v17  ;;  %v430_v14 = vmul.f32 %v1127_v10, %v429_v61  ;;  %vm421_vm9 = vcmp.eq.f32.partialorder %v420_v9, 8.507059e+37  ;;  %v1160_v16 = vperm.slane %v1107_v25, 7  ;;  %vm450_vm1 = vmor %vm448_vm15, %vm449_vm14 }
 0x255   :  { %559 = vperm.xlu1 %716, %v473_v6   ;;  %v424_v54 = vsel %vm421_vm9, %v423_v36, %v419_v33  ;;  %vm433_vm10 = vweird.f32 %v1127_v10  ;;  %v445_v58 = vsub.f32 1.0, %v444_v57  ;;  %vm432_vm11 = vweird.f32 %v1117_v51 }
 0x256   :  { %v431_v18 = vadd.f32 %v1127_v10, %v430_v14  ;;  %v426_v34 = vmul.f32 %v1028_v11, %v424_v54  ;;  %v425_v42 = vmul.f32 %v1046_v35, %v424_v54  ;;  %v436_v23 = vand.u32 2147483647, %v1117_v51  ;;  %vm434_vm12 = vmor %vm432_vm11, %vm433_vm10 }
 0x257   :  { %764 = vrcp.f32 %v1160_v16  ;;  %v446_v59 = vmul.f32 %v761_v1, %v445_v58  ;;  %v476_v47 = vmul.f32 %v763_v24, %v1144_v4  ;;  %v454_v56 = vand.u32 2147483648, %v1125_v55 }
 0x258   :  { %v435_v25 = vsel %vm434_vm12, %v1127_v10, %v431_v18  ;;  %vm437_vm13 = vcmp.eq.f32.partialorder %v436_v23, 8.507059e+37  ;;  %v452_v10 = vand.u32 2147483647, %v1125_v55  ;;  %vm481_vm10 = vweird.f32 %v763_v24 }
 0x259   :  { %v440_v48 = vsel %vm437_vm13, %v439_v31, %v435_v25  ;;  %v447_v11 = vadd.f32 %v761_v1, %v446_v59  ;;  %v477_v35 = vsub.f32 1.0, %v476_v47  ;;  %v455_v53 = vor.u32 1.1754944e-38, %v454_v56 }
 0x25a   :  { %524 = vperm.xlu2 %714, %v410_v5   ;;  %519 = vperm.xlu0 %715, %v409_v22   ;;  %v442_v51 = vmul.f32 %v1041_v26, %v440_v48  ;;  %v441_v13 = vmul.f32 %v1057_v41, %v440_v48  ;;  %vm453_vm9 = vcmp.eq.f32.partialorder %v452_v10, 8.507059e+37  ;;  %v486_v26 = vand.u32 2147483648, %v1144_v4 }
 0x25b   :  { %v451_v63 = vsel %vm450_vm1, %v761_v1, %v447_v11  ;;  %v478_v52 = vmul.f32 %v763_v24, %v477_v35  ;;  %vm480_vm11 = vweird.f32 %v1144_v4  ;;  %v484_v55 = vand.u32 2147483647, %v1144_v4 }
 0x25c   :  { %v456_v17 = vsel %vm453_vm9, %v455_v53, %v451_v63  ;;  %vm482_vm12 = vmor %vm480_vm11, %vm481_vm10  ;;  %v487_v9 = vor.u32 1.1754944e-38, %v486_v26  ;;  %v502_v57 = vand.u32 2147483648, %v1160_v16  ;;  %vm496_vm15 = vweird.f32 %v1160_v16 }
 0x25d   :  { %v765_v43 = vpop.eup %764  ;;  %v479_v61 = vadd.f32 %v763_v24, %v478_v52  ;;  %v458_v41 = vmul.f32 %v1065_v44, %v456_v17  ;;  %v457_v5 = vmul.f32 %v1030_v15, %v456_v17  ;;  %vm485_vm13 = vcmp.eq.f32.partialorder %v484_v55, 8.507059e+37 }
 0x25e   :  { %v492_v6 = vmul.f32 %v765_v43, %v1160_v16  ;;  %vm497_vm14 = vweird.f32 %v765_v43  ;;  %v474_v15 = vmul.f32 %v1043_v32, %v1141_v60  ;;  %v500_v4 = vand.u32 2147483647, %v1160_v16 }
 0x25f   :  { %v483_v1 = vsel %vm482_vm12, %v763_v24, %v479_v61  ;;  %vm498_vm1 = vmor %vm496_vm15, %vm497_vm14  ;;  %v503_v54 = vor.u32 1.1754944e-38, %v502_v57 }
 0x260   :  { %v493_v62 = vsub.f32 1.0, %v492_v6  ;;  %v488_v33 = vsel %vm485_vm13, %v487_v9, %v483_v1  ;;  %vm501_vm9 = vcmp.eq.f32.partialorder %v500_v4, 8.507059e+37 }
 0x261   :  { %v489_v44 = vmul.f32 %v1069_v49, %v488_v33  ;;  %v490_v24 = vmul.f32 %v1062_v45, %v488_v33 }
 0x262   :  { %534 = vperm.xlu2 %714, %v426_v34   ;;  %529 = vperm.xlu0 %715, %v425_v42   ;;  %v494_v22 = vmul.f32 %v765_v43, %v493_v62 }
 0x264   :  { %v495_v14 = vadd.f32 %v765_v43, %v494_v22 }
 0x266   :  { %v499_v36 = vsel %vm498_vm1, %v765_v43, %v495_v14 }
 0x267   :  { %v504_v18 = vsel %vm501_vm9, %v503_v54, %v499_v36 }
 0x268   :  { %v505_v58 = vmul.f32 %v1054_v40, %v504_v18  ;;  %v506_v49 = vmul.f32 %v1072_v50, %v504_v18 }
 0x26a   :  { %544 = vperm.xlu2 %714, %v442_v51   ;;  %539 = vperm.xlu0 %715, %v441_v13  }
 0x272   :  { %554 = vperm.xlu2 %714, %v458_v41   ;;  %549 = vperm.xlu0 %715, %v457_v5  }
 0x27a   :  { %569 = vperm.xlu2 %714, %v489_v44   ;;  %564 = vperm.xlu0 %715, %v474_v15  }
 0x282   :  { %579 = vperm.xlu2 %714, %v505_v58   ;;  %574 = vperm.xlu0 %715, %v490_v24  }
 0x28a   :  { %584 = vperm.xlu0 %715, %v506_v49  }
 0x2ac   :  { %v515_v32 = vpop.permute.xlu2 %514 }
 0x2ad   :  { %v588_v56 = vmul.f32 %v515_v32, %v865_v12 }
 0x2af   :  { %v604_v63 = vsel %vm69_vm0, %v588_v56, 0.0 }
 0x2b4   :  { %v525_v27 = vpop.permute.xlu2 %524 }
 0x2b5   :  { %v590_v45 = vmul.f32 %v525_v27, %v860_v8 }
 0x2b7   :  { %v613_v8 = vsel %vm69_vm0, %v590_v45, 0.0 }
 0x2bc   :  { %v535_v34 = vpop.permute.xlu2 %534 }
 0x2bd   :  { %v592_v11 = vmul.f32 %v535_v34, %v858_v7 }
 0x2c4   :  { %v510_v60 = vpop.permute.xlu0 %509  ;;  %v545_v23 = vpop.permute.xlu2 %544 }
 0x2c5   :  { %v587_v48 = vmul.f32 %v510_v60, %v853_v3  ;;  %v594_v51 = vmul.f32 %v545_v23, %v873_v19 }
 0x2c7   :  { %v560_v35 = vpop.permute.xlu1 %559 }
 0x2c8   :  { %v597_v3 = vmul.f32 %v560_v35, %v885_v28 }
 0x2ca   :  { %v648_v62 = vsel %vm69_vm0, %v597_v3, 0.0 }
 0x2cc   :  { %v520_v16 = vpop.permute.xlu0 %519  ;;  %v555_v59 = vpop.permute.xlu2 %554 }
 0x2cd   :  { %v589_v31 = vmul.f32 %v520_v16, %v851_v2  ;;  %v596_v2 = vmul.f32 %v555_v59, %v889_v30  ;;  %v631_v30 = vsel %vm69_vm0, %v594_v51, 0.0 }
 0x2cf   :  { %v612_v13 = vsel %vm69_vm0, %v589_v31, 0.0  ;;  %v640_v28 = vsel %vm69_vm0, %v596_v2, 0.0 }
 0x2d0   :  { %v614_v10 = vadd.f32 %v613_v8, %v612_v13 }
 0x2d2   :  { %v615_v5 = vrot.slane %v614_v10, 4 }
 0x2d4   :  { %v530_v42 = vpop.permute.xlu0 %529  ;;  %v570_v17 = vpop.permute.xlu2 %569  ;;  %v616_v57 = vadd.f32 %v615_v5, %v614_v10 }
 0x2d5   :  { %v591_v40 = vmul.f32 %v530_v42, %v846_v0  ;;  %v599_v33 = vmul.f32 %v570_v17, %v901_v39 }
 0x2d6   :  { %v617_v49 = vrot.slane %v616_v57, 2 }
 0x2d7   :  { %v621_v0 = vsel %vm69_vm0, %v591_v40, 0.0  ;;  %v657_v18 = vsel %vm69_vm0, %v599_v33, 0.0 }
 0x2d8   :  { %v618_v59 = vadd.f32 %v617_v49, %v616_v57 }
 0x2da   :  { %v619_v51 = vrot.slane %v618_v59, 1 }
 0x2dc   :  { %v540_v25 = vpop.permute.xlu0 %539  ;;  %v580_v32 = vpop.permute.xlu2 %579 }
 0x2dd   :  { %v593_v50 = vmul.f32 %v540_v25, %v877_v21  ;;  %v603_v21 = vsel %vm69_vm0, %v587_v48, 0.0  ;;  %v601_v23 = vmul.f32 %v580_v32, %v899_v38 }
 0x2de   :  { %v605_v53 = vadd.f32 %v604_v63, %v603_v21 }
 0x2df   :  { %v630_v7 = vsel %vm69_vm0, %v593_v50, 0.0  ;;  %v666_v35 = vsel %vm69_vm0, %v601_v23, 0.0 }
 0x2e0   :  { %v632_v61 = vadd.f32 %v631_v30, %v630_v7  ;;  %v606_v22 = vrot.slane %v605_v53, 4 }
 0x2e2   :  { %v633_v9 = vrot.slane %v632_v61, 4  ;;  %v607_v36 = vadd.f32 %v606_v22, %v605_v53 }
 0x2e4   :  { %v550_v47 = vpop.permute.xlu0 %549  ;;  %v634_v54 = vadd.f32 %v633_v9, %v632_v61  ;;  %v608_v39 = vrot.slane %v607_v36, 2 }
 0x2e5   :  { %v595_v43 = vmul.f32 %v550_v47, %v875_v20  ;;  %v622_v20 = vsel %vm69_vm0, %v592_v11, 0.0 }
 0x2e6   :  { %v623_v52 = vadd.f32 %v622_v20, %v621_v0  ;;  %v635_v34 = vrot.slane %v634_v54, 2  ;;  %v609_v48 = vadd.f32 %v608_v39, %v607_v36  ;;  %v620_v20 = vadd.f32 %v619_v51, %v618_v59 }
 0x2e7   :  { %v639_v12 = vsel %vm69_vm0, %v595_v43, 0.0 }
 0x2e8   :  { %v641_v26 = vadd.f32 %v640_v28, %v639_v12  ;;  %v624_v1 = vrot.slane %v623_v52, 4  ;;  %v636_v50 = vadd.f32 %v635_v34, %v634_v54  ;;  %v610_v8 = vrot.slane %v609_v48, 1 }
 0x2ea   :  { %v642_v14 = vrot.slane %v641_v26, 4  ;;  %v625_v15 = vadd.f32 %v624_v1, %v623_v52  ;;  %v637_v3 = vrot.slane %v636_v50, 1  ;;  %v611_v63 = vadd.f32 %v610_v8, %v609_v48 }
 0x2ec   :  { %v565_v19 = vpop.permute.xlu0 %564  ;;  %v643_v58 = vadd.f32 %v642_v14, %v641_v26  ;;  %v626_v16 = vrot.slane %v625_v15, 2  ;;  %v638_v30 = vadd.f32 %v637_v3, %v636_v50  ;;  %v683_v53 = vsel %vm179_vm2, %v620_v20, %v611_v63 }
 0x2ed   :  { %v598_v6 = vmul.f32 %v565_v19, %v887_v29 }
 0x2ee   :  { %v644_v25 = vrot.slane %v643_v58, 2  ;;  %v627_v40 = vadd.f32 %v626_v16, %v625_v15 }
 0x2ef   :  { %v649_v41 = vsel %vm69_vm0, %v598_v6, 0.0 }
 0x2f0   :  { %v650_v55 = vadd.f32 %v649_v41, %v648_v62  ;;  %v645_v43 = vadd.f32 %v644_v25, %v643_v58  ;;  %v628_v38 = vrot.slane %v627_v40, 1 }
 0x2f2   :  { %v651_v29 = vrot.slane %v650_v55, 4  ;;  %v646_v7 = vrot.slane %v645_v43, 1  ;;  %v629_v12 = vadd.f32 %v628_v38, %v627_v40 }
 0x2f4   :  { %v575_v44 = vpop.permute.xlu0 %574  ;;  %v652_v60 = vadd.f32 %v651_v29, %v650_v55  ;;  %v647_v6 = vadd.f32 %v646_v7, %v645_v43  ;;  %v684_v61 = vsel %vm181_vm3, %v629_v12, %v683_v53 }
 0x2f5   :  { %v600_v4 = vmul.f32 %v575_v44, %v897_v37  ;;  %v685_v26 = vsel %vm183_vm4, %v638_v30, %v684_v61 }
 0x2f6   :  { %v653_v37 = vrot.slane %v652_v60, 2  ;;  %v686_v5 = vsel %vm185_vm5, %v647_v6, %v685_v26 }
 0x2f7   :  { %v658_v24 = vsel %vm69_vm0, %v600_v4, 0.0 }
 0x2f8   :  { %v659_v27 = vadd.f32 %v658_v24, %v657_v18  ;;  %v654_v13 = vadd.f32 %v653_v37, %v652_v60 }
 0x2fa   :  { %v660_v42 = vrot.slane %v659_v27, 4  ;;  %v655_v10 = vrot.slane %v654_v13, 1 }
 0x2fc   :  { %v661_v47 = vadd.f32 %v660_v42, %v659_v27  ;;  %v585_v31 = vpop.permute.xlu0 %584  ;;  %v656_v28 = vadd.f32 %v655_v10, %v654_v13 }
 0x2fd   :  { %v602_v45 = vmul.f32 %v585_v31, %v909_v46 }
 0x2fe   :  { %v662_v11 = vrot.slane %v661_v47, 2  ;;  %v687_v1 = vsel %vm187_vm6, %v656_v28, %v686_v5 }
 0x2ff   :  { %v667_v56 = vsel %vm69_vm0, %v602_v45, 0.0 }
 0x300   :  { %v668_v2 = vadd.f32 %v667_v56, %v666_v35  ;;  %v663_v0 = vadd.f32 %v662_v11, %v661_v47 }
 0x302   :  { %v669_v21 = vrot.slane %v668_v2, 4  ;;  %v664_v19 = vrot.slane %v663_v0, 1 }
 0x304   :  { %v670_v46 = vadd.f32 %v669_v21, %v668_v2  ;;  %v665_v62 = vadd.f32 %v664_v19, %v663_v0 }
 0x306   :  { %v671_v52 = vrot.slane %v670_v46, 2  ;;  %v688_v22 = vsel %vm189_vm7, %v665_v62, %v687_v1 }
 0x308   :  { %v672_v17 = vadd.f32 %v671_v52, %v670_v46 }
 0x30a   :  { %v673_v41 = vrot.slane %v672_v17, 1 }
 0x30c   :  { %v674_v55 = vadd.f32 %v673_v41, %v672_v17 }
 0x30e   :  { %v689_v9 = vsel %vm191_vm8, %v674_v55, %v688_v22 }
 0x30f   :  { %691 = vst.msk [vmem:[#allocation6] sm:$0xff] %vm69_vm0, %v689_v9 }
 0x310   :  { %702 = dma.vmem_to_hbm [thread:$0]  %s698_s21, 128, %s700_s24, [#allocation5]  }
 0x311   :  { %816 = dma.done.wait [#allocation5], 128  }
 0x312   :  { %817 = vsyncadd [#allocation5], 4294967168 }
 0x313   :  { %707 = vsyncpa [#allocation4], 1 }
 0x314   :  { %708 = vsyncpa [#allocation5], 1 }

</bundles_post_ra>
